<compile_context>
chip_gen: v7x
topology: tpu7x:2x2x1
jax: 0.10.0
libtpu: 0.0.40
codegen_flags: <defaults>
</compile_context>

<pallas_src>
import functools
import math

import numpy as np
import jax
import jax.numpy as jnp
from jax import lax
from jax.experimental import pallas as pl
from jax.experimental.pallas import tpu as pltpu

_MB = 1024 * 1024


def _round_up(x, m):
    return ((x + m - 1) // m) * m


def _min_sublane(dtype):
    """Minimum sublane multiple for a dtype (8 for 32-bit, 16 bf16, 32 8-bit)."""
    bits = np.dtype(dtype).itemsize * 8
    if bits >= 32:
        return 8
    if bits == 16:
        return 16
    return 32


def _tpu_defaults():
    """Per-generation tile defaults and VMEM budget (roofline-driven)."""
    kind = ""
    try:
        kind = jax.devices()[0].device_kind.lower()
    except Exception:
        pass
    vmem_cap = None
    try:
        vmem_cap = int(pltpu.get_tpu_info().vmem_capacity_bytes)
    except Exception:
        pass
    if ("v5e" in kind) or ("v5 lite" in kind) or ("v5lite" in kind):
        # 197 TF/s / 0.82 TB/s roofline is met around tq~256; the 4x128 MXU
        # gains nothing from tk=512 and the f32 p tile would spill.
        return dict(tq=256, tk=256, two_tc=False, vmem=vmem_cap or 128 * _MB)
    if "v6" in kind:
        # Need ~670 flops/byte to feed 918 TF/s at 1.37 TB/s -> big q blocks.
        return dict(tq=1024, tk=512, two_tc=False, vmem=vmem_cap or 128 * _MB)
    if ("v7" in kind) or ("7x" in kind):
        # 64 MiB VMEM per TC, 2 TCs -> moderate q block, keep >=2 parallel steps.
        return dict(tq=512, tk=512, two_tc=True, vmem=vmem_cap or 64 * _MB)
    # Unknown chip: conservative defaults.
    return dict(tq=512, tk=512, two_tc=True, vmem=vmem_cap or 32 * _MB)


def _flash_attention_kernel(q_ref, k_ref, v_ref, o_ref,
                            m_ref, l_ref, acc_ref,
                            *, scale, lk_valid, block_k, needs_mask,
                            approx_recip):
    """One (batch-block, q-block, k-block) step of flash attention.

    Grid = (B//BB, Lq_p//TQ, Lk_p//TK). The k axis is the reduction axis
    (marked "arbitrary"); m/l/acc VMEM scratch persist across it.
    """
    kb = pl.program_id(2)

    @pl.when(kb == 0)
    def _():
        m_ref[...] = jnp.full_like(m_ref, -jnp.inf)
        l_ref[...] = jnp.zeros_like(l_ref)
        acc_ref[...] = jnp.zeros_like(acc_ref)

    q = q_ref[...]                      # (BB, TQ, D), compute dtype
    if scale is not None:
        # Scale q (BB*TQ*D elems) instead of the (TQ, TK) scores: fewer VALU ops.
        q = q * jnp.asarray(scale, dtype=q.dtype)

    # scores: batched contraction on the shared last dim -> no explicit k.T.
    s = lax.dot_general(
        q, k_ref[...],
        dimension_numbers=(((2,), (2,)), ((0,), (0,))),
        preferred_element_type=jnp.float32)             # (BB, TQ, TK) f32

    if needs_mask:
        # Cheap padded-key mask: (1, 1, TK) lane iota vs. a scalar remainder,
        # broadcast by the add (no full-tile int32 iota / compare).
        rem = lk_valid - kb * block_k                    # scalar, >= 1 always
        col = lax.broadcasted_iota(jnp.int32, (1, 1, block_k), 2)
        bias = jnp.where(col < rem, 0.0, -jnp.inf)       # (1, 1, TK) f32
        s = s + bias

    # Online (flash) softmax; all accumulation in f32.
    m_prev = m_ref[...]                                  # (BB, TQ, 1)
    m_new = jnp.maximum(m_prev, jnp.max(s, axis=-1, keepdims=True))
    alpha = jnp.exp(m_prev - m_new)
    p = jnp.exp(s - m_new)                               # (BB, TQ, TK) f32
    l_ref[...] = alpha * l_ref[...] + jnp.sum(p, axis=-1, keepdims=True)
    acc_ref[...] = alpha * acc_ref[...] + lax.dot_general(
        p.astype(v_ref.dtype), v_ref[...],
        dimension_numbers=(((2,), (1,)), ((0,), (0,))),
        preferred_element_type=jnp.float32)              # (BB, TQ, Dv)
    m_ref[...] = m_new

    @pl.when(kb == pl.num_programs(2) - 1)
    def _():
        # approx (EUP) reciprocal only when the output is 16-bit; exact for f32.
        inv_l = pl.reciprocal(l_ref[...], approx=approx_recip)
        o_ref[...] = (acc_ref[...] * inv_l).astype(o_ref.dtype)


def multimodal_attention(q, k, v, scale=None, attn_mask=None, *,
                         block_q=None, block_k=None, matmul_dtype=None):
    """Pallas TPU forward of the PyTorch `multimodal_attention` module."""
    # PyTorch uses truthiness for `if scale:` / `if attn_mask:`; scale=0.0 is
    # therefore treated as "no scaling", matching the reference module.
    assert attn_mask is None, "attn_mask not supported"  # TODO(synk): mask path
    if not scale:
        scale = None

    B, Lq, D = q.shape
    Bk, Lk, Dk = k.shape
    Bv, Lkv, Dv = v.shape
    assert D == Dk and Bk == B and Bv == B and Lkv == Lk

    out_dtype = q.dtype
    cfg = _tpu_defaults()

    # --- dtype policy ---------------------------------------------------------
    # The MXU is natively bf16; f32 matmuls are multi-pass emulation. For f32
    # callers downcast q/k/v (and hence p) to bf16 for the two dots, keeping
    # preferred_element_type=f32 and all softmax/accumulator math in f32.
    if matmul_dtype is None:
        matmul_dtype = jnp.bfloat16 if q.dtype == jnp.float32 else q.dtype
    compute_dtype = np.dtype(matmul_dtype)
    if q.dtype != compute_dtype:
        q = q.astype(compute_dtype)
        k = k.astype(compute_dtype)
        v = v.astype(compute_dtype)

    # --- tile selection -------------------------------------------------------
    sub = max(_min_sublane(compute_dtype), _min_sublane(out_dtype))
    if block_q is None:
        block_q = cfg["tq"]
    if block_k is None:
        block_k = cfg["tk"]
    tq = _round_up(min(block_q, _round_up(Lq, sub)), sub)
    tk = _round_up(min(block_k, _round_up(Lk, sub)), sub)

    in_bytes = np.dtype(compute_dtype).itemsize
    out_bytes = np.dtype(out_dtype).itemsize

    def footprint(bb_, tq_, tk_):
        # double-buffered input/output blocks + f32 scratch + live s/p tiles.
        blk = 2 * bb_ * (tq_ * D + tk_ * D + tk_ * Dv) * in_bytes
        blk += 2 * bb_ * tq_ * Dv * out_bytes
        scratch = bb_ * tq_ * (Dv + 2) * 4
        temps = 2 * bb_ * tq_ * tk_ * 4
        return blk + scratch + temps

    # VMEM limit: device capacity minus headroom for compiler-internal scratch;
    # never more than (capacity - 16 MiB), never less than the 32 MiB default.
    vmem_limit = int(max(32 * _MB, cfg["vmem"] - 16 * _MB))
    budget = (3 * vmem_limit) // 4
    for _ in range(32):
        if footprint(1, tq, tk) <= budget or (tq <= sub and tk <= sub):
            break
        if tq >= tk and tq > sub:
            tq = max(sub, _round_up(tq // 2, sub))
        else:
            tk = max(sub, _round_up(tk // 2, sub))

    lq_p = _round_up(Lq, tq)
    lk_p = _round_up(Lk, tk)
    n_q_blocks = lq_p // tq

    # Fold batch elements into one grid step when per-step q tiles are tiny
    # (amortizes ~0.35us/step, raises occupancy at small B/Lq), but keep the
    # "parallel" grid extent >= 2 on dual-TensorCore chips (v7x).
    bb_cap = max(1, 256 // tq)
    if cfg["two_tc"] and n_q_blocks == 1:
        bb_cap = min(bb_cap, max(1, B // 2))
    bb = 1
    for cand in range(min(B, bb_cap), 0, -1):
        if B % cand == 0 and footprint(cand, tq, tk) <= budget:
            bb = cand
            break

    # --- pad ragged sequence dims ---------------------------------------------
    # Padded keys are masked with -inf in-kernel; padded q rows are sliced off.
    # A key block is never entirely padding (lk_p - Lk < tk), so the online
    # softmax never sees an all--inf row (no exp(-inf - -inf) NaNs).
    assert lk_p - Lk < tk
    if lq_p != Lq:
        q = jnp.pad(q, ((0, 0), (0, lq_p - Lq), (0, 0)))
    if lk_p != Lk:
        k = jnp.pad(k, ((0, 0), (0, lk_p - Lk), (0, 0)))
        v = jnp.pad(v, ((0, 0), (0, lk_p - Lk), (0, 0)))

    grid = (B // bb, lq_p // tq, lk_p // tk)

    kernel = functools.partial(
        _flash_attention_kernel,
        scale=scale,
        lk_valid=Lk,
        block_k=tk,
        needs_mask=(lk_p != Lk),
        approx_recip=(np.dtype(out_dtype).itemsize < 4),
    )

    out = pl.pallas_call(
        kernel,
        out_shape=jax.ShapeDtypeStruct((B, lq_p, Dv), out_dtype),
        grid_spec=pltpu.PrefetchScalarGridSpec(
            num_scalar_prefetch=0,
            grid=grid,
            in_specs=[
                pl.BlockSpec((bb, tq, D), lambda b, qi, ki: (b, qi, 0)),
                pl.BlockSpec((bb, tk, D), lambda b, qi, ki: (b, ki, 0)),
                pl.BlockSpec((bb, tk, Dv), lambda b, qi, ki: (b, ki, 0)),
            ],
            out_specs=pl.BlockSpec((bb, tq, Dv), lambda b, qi, ki: (b, qi, 0)),
            scratch_shapes=[
                pltpu.VMEM((bb, tq, 1), jnp.float32),    # running max m
                pltpu.VMEM((bb, tq, 1), jnp.float32),    # running denom l
                pltpu.VMEM((bb, tq, Dv), jnp.float32),   # output accumulator
            ],
        ),
        compiler_params=pltpu.CompilerParams(
            dimension_semantics=("parallel", "parallel", "arbitrary"),
            vmem_limit_bytes=vmem_limit,
        ),
    )(q, k, v)

    if lq_p != Lq:
        out = out[:, :Lq, :]
    return out


def _reference(q, k, v, scale=None):
    s = jnp.einsum("bqd,bkd->bqk", q.astype(jnp.float32), k.astype(jnp.float32))
    if scale:
        s = s * scale
    p = jax.nn.softmax(s, axis=-1)
    return jnp.einsum("bqk,bkd->bqd", p, v.astype(jnp.float32)).astype(q.dtype)


if __name__ == "__main__":
    keys = jax.random.split(jax.random.PRNGKey(0), 6)

    # Case 1: small shapes implied by the module's forward; default dtype
    # policy (f32 inputs -> bf16 MXU matmuls, f32 softmax/accumulators).
    B, Lq, Lk, D = 2, 8, 8, 32
    q = jax.random.normal(keys[0], (B, Lq, D), dtype=jnp.float32)
    k = jax.random.normal(keys[1], (B, Lk, D), dtype=jnp.float32)
    v = jax.random.normal(keys[2], (B, Lk, D), dtype=jnp.float32)
    scale = 1.0 / math.sqrt(D)

    out = multimodal_attention(q, k, v, scale=scale)
    jax.block_until_ready(out)
    ref = _reference(q, k, v, scale=scale)
    assert out.shape == ref.shape
    assert jnp.allclose(out, ref, atol=5e-2, rtol=5e-2), "mismatch (small case)"

    # Case 2: ragged, multi-k-block case on the exact f32 matmul path:
    # exercises flash accumulation across k blocks, pl.when init/finalize,
    # and the padded-key masking path.
    B2, Lq2, Lk2, D2 = 2, 37, 70, 32
    q2 = jax.random.normal(keys[3], (B2, Lq2, D2), dtype=jnp.float32)
    k2 = jax.random.normal(keys[4], (B2, Lk2, D2), dtype=jnp.float32)
    v2 = jax.random.normal(keys[5], (B2, Lk2, D2), dtype=jnp.float32)
    scale2 = 1.0 / math.sqrt(D2)
    out2 = multimodal_attention(q2, k2, v2, scale=scale2,
                                block_q=32, block_k=32,
                                matmul_dtype=jnp.float32)
    jax.block_until_ready(out2)
    ref2 = _reference(q2, k2, v2, scale=scale2)
    assert out2.shape == ref2.shape
    assert jnp.allclose(out2, ref2, atol=2e-2, rtol=2e-2), "mismatch (tiled case)"

    print("KERNEL_OK")
</pallas_src>

<mosaic_0001>
module attributes {stable_mosaic.version = 11 : i64} {
  func.func @_flash_attention_kernel(%arg0: i32, %arg1: i32, %arg2: i32, %arg3: memref<1x16x32xbf16, #tpu.memory_space<vmem>>, %arg4: memref<1x16x32xbf16, #tpu.memory_space<vmem>>, %arg5: memref<1x16x32xbf16, #tpu.memory_space<vmem>>, %arg6: memref<1x16x32xf32, #tpu.memory_space<vmem>>, %arg7: memref<1x16x1xf32, #tpu.memory_space<vmem>>, %arg8: memref<1x16x1xf32, #tpu.memory_space<vmem>>, %arg9: memref<1x16x32xf32, #tpu.memory_space<vmem>>) attributes {dimension_semantics = [#tpu.dimension_semantics<parallel>, #tpu.dimension_semantics<parallel>, #tpu.dimension_semantics<arbitrary>], iteration_bounds = array<i64: 2, 1, 1>, scalar_prefetch = 0 : i64, scratch_operands = 3 : i64, tpu.core_type = #tpu.core_type<tc>, window_params = [{transform_indices = @transform_0, window_bounds = array<i64: 1, 16, 32>}, {transform_indices = @transform_1, window_bounds = array<i64: 1, 16, 32>}, {transform_indices = @transform_2, window_bounds = array<i64: 1, 16, 32>}, {transform_indices = @transform_3, window_bounds = array<i64: 1, 16, 32>}]} {
    %c0_i32 = arith.constant 0 : i32
    %0 = arith.cmpi eq, %arg2, %c0_i32 : i32
    %1 = arith.extui %0 : i1 to i32
    %c0_i32_0 = arith.constant 0 : i32
    %2 = arith.cmpi ne, %1, %c0_i32_0 : i32
    scf.if %2 {
      %cst_35 = arith.constant 0xFF800000 : f32
      %45 = vector.broadcast %cst_35 : f32 to vector<1x16x1xf32>
      %c0_36 = arith.constant 0 : index
      %c0_37 = arith.constant 0 : index
      %c0_38 = arith.constant 0 : index
      %46 = vector.load %arg7[%c0_36, %c0_37, %c0_38] : memref<1x16x1xf32, #tpu.memory_space<vmem>>, vector<1x16x1xf32>
      tpu.vector_store %arg7[%c0_36, %c0_37, %c0_38], %45 {strides = array<i32>} : memref<1x16x1xf32, #tpu.memory_space<vmem>>, vector<1x16x1xf32>,
      %cst_39 = arith.constant 0.000000e+00 : f32
      %47 = vector.broadcast %cst_39 : f32 to vector<1x16x1xf32>
      %c0_40 = arith.constant 0 : index
      %c0_41 = arith.constant 0 : index
      %c0_42 = arith.constant 0 : index
      %48 = vector.load %arg8[%c0_40, %c0_41, %c0_42] : memref<1x16x1xf32, #tpu.memory_space<vmem>>, vector<1x16x1xf32>
      tpu.vector_store %arg8[%c0_40, %c0_41, %c0_42], %47 {strides = array<i32>} : memref<1x16x1xf32, #tpu.memory_space<vmem>>, vector<1x16x1xf32>,
      %cst_43 = arith.constant 0.000000e+00 : f32
      %49 = vector.broadcast %cst_43 : f32 to vector<1x16x32xf32>
      %c0_44 = arith.constant 0 : index
      %c0_45 = arith.constant 0 : index
      %c0_46 = arith.constant 0 : index
      %50 = vector.load %arg9[%c0_44, %c0_45, %c0_46] : memref<1x16x32xf32, #tpu.memory_space<vmem>>, vector<1x16x32xf32>
      tpu.vector_store %arg9[%c0_44, %c0_45, %c0_46], %49 {strides = array<i32>} : memref<1x16x32xf32, #tpu.memory_space<vmem>>, vector<1x16x32xf32>,
    } else {
    }
    %c0 = arith.constant 0 : index
    %c0_1 = arith.constant 0 : index
    %c0_2 = arith.constant 0 : index
    %3 = vector.load %arg3[%c0, %c0_1, %c0_2] : memref<1x16x32xbf16, #tpu.memory_space<vmem>>, vector<1x16x32xbf16>
    %cst = arith.constant 1.767580e-01 : bf16
    %4 = vector.broadcast %cst : bf16 to vector<1x16x32xbf16>
    %5 = arith.mulf %3, %4 : vector<1x16x32xbf16>
    %c0_3 = arith.constant 0 : index
    %c0_4 = arith.constant 0 : index
    %c0_5 = arith.constant 0 : index
    %6 = vector.load %arg4[%c0_3, %c0_4, %c0_5] : memref<1x16x32xbf16, #tpu.memory_space<vmem>>, vector<1x16x32xbf16>
    %cst_6 = arith.constant dense<0.000000e+00> : vector<1x16x16xf32>
    %7 = tpu.matmul %5, %6, %cst_6 {dimension_numbers = #tpu.dot_dimension_numbers<[2], [2], [1], [1], [0, 0, 0, 1, 1, 1], [0], [0]>} : vector<1x16x32xbf16>, vector<1x16x32xbf16>, vector<1x16x16xf32> -> vector<1x16x16xf32>
    %c16_i32 = arith.constant 16 : i32
    %8 = arith.muli %arg2, %c16_i32 : i32
    %c8_i32 = arith.constant 8 : i32
    %9 = arith.subi %c8_i32, %8 : i32
    %10 = tpu.iota {dimensions = array<i32: 2>} : vector<1x1x16xi32>
    %11 = vector.broadcast %9 : i32 to vector<1x1x16xi32>
    %12 = arith.cmpi slt, %10, %11 : vector<1x1x16xi32>
    %cst_7 = arith.constant 0.000000e+00 : f32
    %cst_8 = arith.constant 0xFF800000 : f32
    %13 = vector.broadcast %cst_7 : f32 to vector<1x1x16xf32>
    %14 = vector.broadcast %cst_8 : f32 to vector<1x1x16xf32>
    %15 = arith.select %12, %13, %14 : vector<1x1x16xi1>, vector<1x1x16xf32>
    %16 = vector.broadcast %15 : vector<1x1x16xf32> to vector<1x16x16xf32>
    %17 = arith.addf %7, %16 : vector<1x16x16xf32>
    %c0_9 = arith.constant 0 : index
    %c0_10 = arith.constant 0 : index
    %c0_11 = arith.constant 0 : index
    %18 = vector.load %arg7[%c0_9, %c0_10, %c0_11] : memref<1x16x1xf32, #tpu.memory_space<vmem>>, vector<1x16x1xf32>
    %cst_12 = arith.constant dense<0xFF800000> : vector<1x16xf32>
    %19 = vector.multi_reduction <maximumf>, %17, %cst_12 [2] : vector<1x16x16xf32> to vector<1x16xf32>
    %20 = vector.shape_cast %19 : vector<1x16xf32> to vector<1x16x1xf32>
    %21 = arith.maximumf %18, %20 : vector<1x16x1xf32>
    %22 = arith.subf %18, %21 : vector<1x16x1xf32>
    %23 = math.exp %22 : vector<1x16x1xf32>
    %24 = vector.broadcast %21 : vector<1x16x1xf32> to vector<1x16x16xf32>
    %25 = arith.subf %17, %24 : vector<1x16x16xf32>
    %26 = math.exp %25 : vector<1x16x16xf32>
    %c0_13 = arith.constant 0 : index
    %c0_14 = arith.constant 0 : index
    %c0_15 = arith.constant 0 : index
    %27 = vector.load %arg8[%c0_13, %c0_14, %c0_15] : memref<1x16x1xf32, #tpu.memory_space<vmem>>, vector<1x16x1xf32>
    %28 = arith.mulf %23, %27 : vector<1x16x1xf32>
    %cst_16 = arith.constant dense<0.000000e+00> : vector<1x16xf32>
    %29 = vector.multi_reduction <add>, %26, %cst_16 [2] : vector<1x16x16xf32> to vector<1x16xf32>
    %30 = vector.shape_cast %29 : vector<1x16xf32> to vector<1x16x1xf32>
    %31 = arith.addf %28, %30 : vector<1x16x1xf32>
    %c0_17 = arith.constant 0 : index
    %c0_18 = arith.constant 0 : index
    %c0_19 = arith.constant 0 : index
    %32 = vector.load %arg8[%c0_17, %c0_18, %c0_19] : memref<1x16x1xf32, #tpu.memory_space<vmem>>, vector<1x16x1xf32>
    tpu.vector_store %arg8[%c0_17, %c0_18, %c0_19], %31 {strides = array<i32>} : memref<1x16x1xf32, #tpu.memory_space<vmem>>, vector<1x16x1xf32>,
    %c0_20 = arith.constant 0 : index
    %c0_21 = arith.constant 0 : index
    %c0_22 = arith.constant 0 : index
    %33 = vector.load %arg9[%c0_20, %c0_21, %c0_22] : memref<1x16x32xf32, #tpu.memory_space<vmem>>, vector<1x16x32xf32>
    %34 = vector.broadcast %23 : vector<1x16x1xf32> to vector<1x16x32xf32>
    %35 = arith.mulf %34, %33 : vector<1x16x32xf32>
    %36 = arith.truncf %26 : vector<1x16x16xf32> to vector<1x16x16xbf16>
    %c0_23 = arith.constant 0 : index
    %c0_24 = arith.constant 0 : index
    %c0_25 = arith.constant 0 : index
    %37 = vector.load %arg5[%c0_23, %c0_24, %c0_25] : memref<1x16x32xbf16, #tpu.memory_space<vmem>>, vector<1x16x32xbf16>
    %cst_26 = arith.constant dense<0.000000e+00> : vector<1x16x32xf32>
    %38 = tpu.matmul %36, %37, %cst_26 {dimension_numbers = #tpu.dot_dimension_numbers<[2], [1], [1], [2], [0, 0, 0, 1, 1, 2], [0], [0]>} : vector<1x16x16xbf16>, vector<1x16x32xbf16>, vector<1x16x32xf32> -> vector<1x16x32xf32>
    %39 = arith.addf %35, %38 : vector<1x16x32xf32>
    %c0_27 = arith.constant 0 : index
    %c0_28 = arith.constant 0 : index
    %c0_29 = arith.constant 0 : index
    %40 = vector.load %arg9[%c0_27, %c0_28, %c0_29] : memref<1x16x32xf32, #tpu.memory_space<vmem>>, vector<1x16x32xf32>
    tpu.vector_store %arg9[%c0_27, %c0_28, %c0_29], %39 {strides = array<i32>} : memref<1x16x32xf32, #tpu.memory_space<vmem>>, vector<1x16x32xf32>,
    %c0_30 = arith.constant 0 : index
    %c0_31 = arith.constant 0 : index
    %c0_32 = arith.constant 0 : index
    %41 = vector.load %arg7[%c0_30, %c0_31, %c0_32] : memref<1x16x1xf32, #tpu.memory_space<vmem>>, vector<1x16x1xf32>
    tpu.vector_store %arg7[%c0_30, %c0_31, %c0_32], %21 {strides = array<i32>} : memref<1x16x1xf32, #tpu.memory_space<vmem>>, vector<1x16x1xf32>,
    %c0_i32_33 = arith.constant 0 : i32
    %42 = arith.cmpi eq, %arg2, %c0_i32_33 : i32
    %43 = arith.extui %42 : i1 to i32
    %c0_i32_34 = arith.constant 0 : i32
    %44 = arith.cmpi ne, %43, %c0_i32_34 : i32
    scf.if %44 {
      %c0_35 = arith.constant 0 : index
      %c0_36 = arith.constant 0 : index
      %c0_37 = arith.constant 0 : index
      %45 = vector.load %arg8[%c0_35, %c0_36, %c0_37] : memref<1x16x1xf32, #tpu.memory_space<vmem>>, vector<1x16x1xf32>
      %46 = tpu.reciprocal %45 : vector<1x16x1xf32> -> vector<1x16x1xf32>
      %c0_38 = arith.constant 0 : index
      %c0_39 = arith.constant 0 : index
      %c0_40 = arith.constant 0 : index
      %47 = vector.load %arg9[%c0_38, %c0_39, %c0_40] : memref<1x16x32xf32, #tpu.memory_space<vmem>>, vector<1x16x32xf32>
      %48 = vector.broadcast %46 : vector<1x16x1xf32> to vector<1x16x32xf32>
      %49 = arith.mulf %47, %48 : vector<1x16x32xf32>
      %c0_41 = arith.constant 0 : index
      %c0_42 = arith.constant 0 : index
      %c0_43 = arith.constant 0 : index
      %50 = vector.load %arg6[%c0_41, %c0_42, %c0_43] : memref<1x16x32xf32, #tpu.memory_space<vmem>>, vector<1x16x32xf32>
      tpu.vector_store %arg6[%c0_41, %c0_42, %c0_43], %49 {strides = array<i32>} : memref<1x16x32xf32, #tpu.memory_space<vmem>>, vector<1x16x32xf32>,
    } else {
    }
    return
  }
  func.func @transform_0(%arg0: i32, %arg1: i32, %arg2: i32) -> (i32, i32, i32) {
    %c0_i32 = arith.constant 0 : i32
    %c0_i32_0 = arith.constant 0 : i32
    return %arg0, %arg1, %c0_i32 : i32, i32, i32
  }
  func.func @transform_1(%arg0: i32, %arg1: i32, %arg2: i32) -> (i32, i32, i32) {
    %c0_i32 = arith.constant 0 : i32
    %c0_i32_0 = arith.constant 0 : i32
    return %arg0, %arg2, %c0_i32 : i32, i32, i32
  }
  func.func @transform_2(%arg0: i32, %arg1: i32, %arg2: i32) -> (i32, i32, i32) {
    %c0_i32 = arith.constant 0 : i32
    %c0_i32_0 = arith.constant 0 : i32
    return %arg0, %arg2, %c0_i32 : i32, i32, i32
  }
  func.func @transform_3(%arg0: i32, %arg1: i32, %arg2: i32) -> (i32, i32, i32) {
    %c0_i32 = arith.constant 0 : i32
    %c0_i32_0 = arith.constant 0 : i32
    return %arg0, %arg1, %c0_i32 : i32, i32, i32
  }
}

</mosaic_0001>

<bundles_post_ra>
// kernel: tpu_custom_call.1
= control target key start
LH: loop header
LB: loop body
LE: loop exit
PB: predicated region body
PF: predicated region fallthrough
CT: control target
= control target key end

     0   :  { %s1346_s0 = inlined_call_operand.hbm [shape: bf16[2,16,32], index: 0, kind: input, shape index: {}]   ;;  %s1347_s1 = inlined_call_operand.hbm [shape: bf16[2,16,32], index: 1, kind: input, shape index: {}]   ;;  %s1348_s2 = inlined_call_operand.hbm [shape: bf16[2,16,32], index: 2, kind: input, shape index: {}]   ;;  %s1349_s3 = inlined_call_operand.hbm [shape: f32[2,16,32], index: 3, kind: output, shape index: {}]  }
   0x1   :  { %1359 = sst [smem:[#allocation18_spill]] %s1347_s1 }
   0x2   :  { %8 = vsyncpa [#allocation6], 0 }
   0x3   :  { %10 = vsyncpa [#allocation6 + $0x1], 0 }
   0x4   :  { %11 = vsyncpa [#allocation9], 0 }
   0x5   :  { %13 = vsyncpa [#allocation9 + $0x1], 0 }
   0x6   :  { %14 = vsyncpa [#allocation7], 0 }
   0x7   :  { %16 = vsyncpa [#allocation7 + $0x1], 0  ;;  %s1041_s12 = smov 0   ;;  %s1043_s13 = smov 0  }
   0x8   :  { %s1045_s14 = smov 0   ;;  %s1047_s15 = smov 0  }
   0x9   :  { %s1049_s16 = smov 0   ;;  %s1051_s17 = smov 0  }
   0xa LB: > { %1360 = sst [smem:[#allocation15_spill]] %s1003_s16  ;;  %s1072_s18 = sadd.s32 4294967295, %s1007_s17   ;;  %s1007_s17 = sphi %s1051_s17, %s22_s17   ;;  %s1003_s16 = sphi %s1049_s16, %s1387_s16   ;;  %s999_s15 = sphi %s1047_s15, %s1382_s15   ;;  %s995_s14 = sphi %s1045_s14, %s1386_s14   ;;  %s991_s13 = sphi %s1043_s13, %s1385_s13   ;;  %s987_s12 = sphi %s1041_s12, %s1384_s12  }
   0xb   : > { %s688_s19 = sadd.s32 4294967294, %s1007_s17   ;;  %s41_s20 = sadd.s32 1, %s1003_s16 }
   0xc   : > { %s50_s21 = sadd.s32 1, %s995_s14  ;;  %p43_p0 = scmp.ge.s32.totalorder %s41_s20, 2 }
   0xd   : > { %p57_p1 = scmp.ne.s32.totalorder %s995_s14, %s991_s13  ;;  %p58_p2 = scmp.eq.s32.totalorder %s1007_s17, 0 }
   0xe   : > { %p63_p3 = scmp.ne.s32.totalorder %s991_s13, %s987_s12  ;;  %s1389_s20 = smov (%p43_p0, %s41_s20), 0 }
   0xf   : > { %1361 = sst [smem:[#allocation16_spill]] %s1389_s20  ;;  %p1084_p4 = por %p58_p2, %p57_p1 }
  0x10   : > { %p64_p5 = scmp.eq.s32.totalorder %s1072_s18, 0  ;;  %s45_s23 = ssub.s32 %s1003_s16, %s1389_s20 }
  0x11   : > { %p145_p6 = scmp.eq.s32.totalorder %s1072_s18, 1  ;;  %p48_p7 = scmp.eq.s32.totalorder %s45_s23, 0 }
  0x12   : > { %p1092_p8 = por %p64_p5, %p63_p3  ;;  %p151_p10 = scmp.eq.s32.totalorder %s688_s19, 1 }
  0x13   : > { %p1096_p9 = por %p145_p6, %p57_p1  ;;  %p757_p13 = scmp.lt.s32.totalorder %s1007_s17, 2 }
  0x14   : > { %s1363_s24 = scalar_select %p1092_p8, 1, 0 }
  0x15   : > { %s1364_s25 = scalar_select %p1096_p9, 1, 0 }
  0x16   : > { %s1101_s26 = scalar_select %p48_p7, %s995_s14, %s50_s21  }
  0x17   : > { %p1103_p11 = por %p151_p10, %p63_p3  ;;  %s1352_s28 = sand.u32 1, %s995_s14  }
  0x18   : > { %1365 = sst [smem:[#allocation17_spill]] %s1101_s26  ;;  %s1112_s29 = sshll.u32 %s1352_s28, 3 }
  0x19   : > { %s1366_s27 = scalar_select %p1103_p11, 1, 0 }
  0x1a   : > { %s1115_s30 = sshll.u32 %s1003_s16, 7  ;;  %p1119_p0 = pnand %p757_p13, %p1084_p4 }
  0x1b   : > { %s194_s5 = sand.u32 1, %s1007_s17   ;;  %s1368_s1 = sld [smem:[#allocation18_spill]] }
  0x1c   : > { %s198_s9 = scalar_lea.vmem [#allocation8], %s1112_s29  ;;  %s1135_s11 = scalar_lea.sflag [#allocation9], %s194_s5 }
  0x1d   : > { %s207_s10 = sshll.u32 %s198_s9, 4  ;;  %p1141_p4 = pneg %p1119_p0  ;;  %s1132_s10 = int_to_ptr.vmem [resolvable:$true] %s207_s10 }
  0x21   : > { %s1128_s8 = scalar_lea.hbm %s1368_s1, %s1115_s30  ;;  %s836_s6 = scalar_lea.hbm %s1368_s1, 256 }
  0x22   : > { %s831_s19 = scalar_lea.hbm %s1128_s8, 128  ;;  %p837_p7 = scmp.lt.u32.totalorder %s1128_s8, %s1368_s1 }
  0x23   : > { %p832_p3 = scmp.ne.s32.totalorder %s1128_s8, %s831_s19  ;;  %p838_p10 = scmp.lt.u32.totalorder %s836_s6, %s831_s19 }
  0x24   : > { %p840_p12 = scmp.lt.u32.totalorder %s831_s19, %s1128_s8 }
  0x25   : > { %p834_p5 = pnand %p1141_p4, %p832_p3  ;;  %p839_p13 = por %p838_p10, %p837_p7 }
  0x27   : > { %p835_p6 = pneg %p834_p5  ;;  %p841_p1 = por %p840_p12, %p839_p13 }
  0x29   : > { %p842_p2 = pnand %p841_p1, %p835_p6 }
  0x2b   : > { %845 = shalt.err (!%p842_p2)
}
  0x2c   : > { %s846_s5 = scalar_lea.vmem %s1132_s10, 128  ;;  %s1009_s22 = smov [#allocation8]  }
  0x2d   : > { %p847_p3 = scmp.ne.s32.totalorder %s1132_s10, %s846_s5  ;;  %s851_s23 = sshll.u32 %s1009_s22, 4  ;;  %s852_s23 = int_to_ptr.vmem [resolvable:$false] %s851_s23 }
  0x2e   : > { %s853_s7 = scalar_lea.vmem %s852_s23, 256  ;;  %p854_p9 = scmp.lt.s32.totalorder %s1132_s10, %s852_s23 }
  0x2f   : > { %p849_p5 = pnand %p847_p3, %p1141_p4  ;;  %p855_p8 = scmp.lt.s32.totalorder %s853_s7, %s846_s5 }
  0x31   : > { %p850_p11 = pneg %p849_p5  ;;  %p856_p7 = por %p855_p8, %p854_p9 }
  0x33   : > { %p857_p10 = pnand %p856_p7, %p850_p11 }
  0x35   : > { %860 = shalt.err (!%p857_p10)
}
  0x36   : > { %s1353_s19 = smov 64   ;;  %s1355_s6 = smov 4  }
  0x37   : > { %749 = dma.hbm_to_vmem [thread:$0]  (!%p1119_p0), %s1128_s8, 128, %s1132_s10, %s1135_s11, %s1353_s19, %s1353_s19, %s1355_s6  }
  0x38   : > { %p1370_p8 = scmp.lt.s32.totalorder %s1007_s17, 3  ;;  %p1371_p9 = scmp.ge.s32.totalorder %s1007_s17, 1 }
  0x39   : > { %s1180_s23 = scalar_lea.hbm %s1346_s0, %s1115_s30  ;;  %s175_s7 = scalar_lea.vmem [#allocation5], %s1112_s29 }
  0x3a   : > { %p1172_p11 = pnand %p1371_p9, %p1370_p8  ;;  %s184_s28 = sshll.u32 %s175_s7, 4  ;;  %s1183_s28 = int_to_ptr.vmem [resolvable:$true] %s184_s28 }
  0x3b   : > { %s1189_s19 = scalar_lea.hbm %s1348_s2, %s1115_s30  ;;  %s1373_s6 = sand.u32 1, %s995_s14  }
  0x3c   : > { %s1372_s9 = scalar_select %p1172_p11, 1, 0 }
  0x3d   : > { %s1193_s1 = scalar_lea.sflag [#allocation6], %s1373_s6  ;;  %s861_s20 = scalar_lea.hbm %s1180_s23, 128 }
  0x3e   : > { %p862_p12 = scmp.ne.s32.totalorder %s1180_s23, %s861_s20  ;;  %s866_s16 = scalar_lea.hbm %s1346_s0, 256 }
  0x3f   : > { %p867_p6 = scmp.lt.u32.totalorder %s1180_s23, %s1346_s0  ;;  %p868_p13 = scmp.lt.u32.totalorder %s866_s16, %s861_s20 }
  0x40   : > { %p864_p1 = pnand %p862_p12, %p1141_p4  ;;  %p870_p5 = scmp.lt.u32.totalorder %s861_s20, %s1180_s23 }
  0x41   : > { %p869_p3 = por %p868_p13, %p867_p6 }
  0x42   : > { %p865_p2 = pneg %p864_p1 }
  0x43   : > { %p871_p7 = por %p870_p5, %p869_p3 }
  0x45   : > { %p872_p10 = pnand %p871_p7, %p865_p2 }
  0x47   : > { %875 = shalt.err (!%p872_p10)
}
  0x48   : > { %s876_s30 = scalar_lea.vmem %s1183_s28, 128  ;;  %s1012_s6 = smov [#allocation5]  }
  0x49   : > { %p877_p8 = scmp.ne.s32.totalorder %s1183_s28, %s876_s30  ;;  %s881_s8 = sshll.u32 %s1012_s6, 4  ;;  %s882_s8 = int_to_ptr.vmem [resolvable:$false] %s881_s8 }
  0x4a   : > { %s883_s26 = scalar_lea.vmem %s882_s8, 256  ;;  %p884_p1 = scmp.lt.s32.totalorder %s1183_s28, %s882_s8 }
  0x4b   : > { %p879_p9 = pnand %p877_p8, %p1141_p4  ;;  %p885_p11 = scmp.lt.s32.totalorder %s883_s26, %s876_s30 }
  0x4d   : > { %p880_p12 = pneg %p879_p9  ;;  %p886_p6 = por %p885_p11, %p884_p1 }
  0x4f   : > { %p887_p13 = pnand %p886_p6, %p880_p12 }
  0x51   : > { %890 = shalt.err (!%p887_p13)
}
  0x52   : > { %s1374_s16 = smov 4   ;;  %s1375_s20 = smov 64  }
  0x53   : > { %746 = dma.hbm_to_vmem [thread:$0]  (!%p1119_p0), %s1180_s23, 128, %s1183_s28, %s1193_s1, %s1375_s20, %s1375_s20, %s1374_s16  }
  0x54   : > { %s221_s10 = scalar_lea.vmem [#allocation10], %s1112_s29  ;;  %s891_s22 = scalar_lea.hbm %s1189_s19, 128 }
  0x55   : > { %s230_s5 = sshll.u32 %s221_s10, 4  ;;  %p892_p11 = scmp.ne.s32.totalorder %s1189_s19, %s891_s22  ;;  %s1221_s5 = int_to_ptr.vmem [resolvable:$true] %s230_s5 }
  0x56   : > { %s896_s6 = scalar_lea.hbm %s1348_s2, 256  ;;  %p897_p5 = scmp.lt.u32.totalorder %s1189_s19, %s1348_s2 }
  0x57   : > { %p894_p2 = pnand %p892_p11, %p1141_p4  ;;  %p898_p7 = scmp.lt.u32.totalorder %s896_s6, %s891_s22 }
  0x58   : > { %p900_p8 = scmp.lt.u32.totalorder %s891_s22, %s1189_s19 }
  0x59   : > { %p895_p3 = pneg %p894_p2  ;;  %p899_p10 = por %p898_p7, %p897_p5 }
  0x5b   : > { %p901_p9 = por %p900_p8, %p899_p10 }
  0x5d   : > { %p902_p12 = pnand %p901_p9, %p895_p3 }
  0x5f   : > { %905 = shalt.err (!%p902_p12)
}
  0x60   : > { %s906_s1 = scalar_lea.vmem %s1221_s5, 128  ;;  %s1013_s28 = smov [#allocation10]  }
  0x61   : > { %p907_p1 = scmp.ne.s32.totalorder %s1221_s5, %s906_s1  ;;  %s911_s29 = sshll.u32 %s1013_s28, 4  ;;  %s912_s29 = int_to_ptr.vmem [resolvable:$false] %s911_s29 }
  0x62   : > { %s913_s23 = scalar_lea.vmem %s912_s29, 256  ;;  %p914_p11 = scmp.lt.s32.totalorder %s1221_s5, %s912_s29 }
  0x63   : > { %p909_p6 = pnand %p907_p1, %p1141_p4  ;;  %p915_p2 = scmp.lt.s32.totalorder %s913_s23, %s906_s1 }
  0x65   : > { %p910_p13 = pneg %p909_p6  ;;  %p916_p5 = por %p915_p2, %p914_p11 }
  0x67   : > { %p917_p7 = pnand %p916_p5, %p910_p13 }
  0x69   : > { %920 = shalt.err (!%p917_p7)
}
  0x6a   : > { %752 = dma.hbm_to_vmem [thread:$0]  (!%p1119_p0), %s1189_s19, 128, %s1221_s5, %s1135_s11, %s1375_s20, %s1375_s20, %s1374_s16  }
  0x6b   : > { %p1376_p4 = scmp.ne.s32.totalorder %s1372_s9, 0 }
  0x6c   : > { %s1251_s21 = sand.u32 (!%p1376_p4), 1, %s991_s13   ;;  %p1377_p3 = scmp.ne.s32.totalorder (!%p1376_p4), %s1363_s24, 0 }
  0x6d   : > { %242 = sbr.rel (%p1376_p4) target bundleno = 945 (0x3b1), region = 32  ;;  %s1254_s10 = sshll.u32 (!%p1376_p4), %s1251_s21, 3 }
  0x6e   : > { %s245_s4 = scalar_lea.sflag (!%p1376_p4), [#allocation6], %s1251_s21  ;;  %s248_s22 = scalar_lea.vmem (!%p1376_p4), [#allocation5], %s1254_s10 }
  0x74   : > { %974 = dma.done.wait (%p1377_p3), %s245_s4, 128  }
  0x75   : > { %976 = vsyncadd (%p1377_p3), %s245_s4, 4294967168  ;;  %s253_s11 = sand.u32 1, %s1072_s18   ;;  %s257_s9 = scalar_lea.vmem [#allocation8], %s1254_s10 }
  0x76   : > { %s254_s19 = scalar_lea.sflag [#allocation9], %s253_s11 }
  0x77   : > { %978 = dma.done.wait (%p1377_p3), %s254_s19, 256  }
  0x78   : > { %980 = vsyncadd (%p1377_p3), %s254_s19, 4294967040  ;;  %vm314_vm0 = vcmask 261120   ;;  %vm309_vm1 = vcmask 7168   ;;  %v1014_v0 = vmov 0.0   ;;  %vm1015_vm2 = vmmov 0   ;;  %v817_v2 = vld [vmem:[%s257_s9] sm:$0xff]  }
  0x79   : > { %723 = vmatprep.subr.bf16.mxu0 %v1014_v0  ;;  %315 = vst.msk [vmem:[#allocation4] sm:$0xff] %vm314_vm0, %v1014_v0  ;;  %316 = vst.msk [vmem:[#allocation4 + $0x8] sm:$0xff] %vm314_vm0, %v1014_v0  ;;  %725 = vmatprep.mubr.msk.bf16.mxu0 %vm1015_vm2, %v1014_v0  ;;  %v1016_v1 = vmov -inf   ;;  %v317_v3 = vld [vmem:[%s248_s22] sm:$0xf]  ;;  %v345_v5 = vsel %vm314_vm0, %v817_v2, 0  ;;  %v325_v9 = vlaneseq }
  0x7a   : > { %312 = vst.msk [vmem:[#allocation3] sm:$0xff] %vm309_vm1, %v1014_v0  ;;  %313 = vst.msk [vmem:[#allocation3 + $0x8] sm:$0xff] %vm309_vm1, %v1014_v0  ;;  %729 = vmatprep.subr.bf16.mxu1 %v1014_v0  ;;  %731 = vmatprep.mubr.msk.bf16.mxu1 %vm1015_vm2, %v1014_v0  ;;  %v318_v4 = vld [vmem:[%s248_s22 + $0x4] sm:$0xf]  ;;  %v319_v6 = vmul.bf16 1043676725, %v317_v3 }
  0x7b   : > { %310 = vst.msk [vmem:[#allocation2] sm:$0xff] %vm309_vm1, %v1016_v1  ;;  %311 = vst.msk [vmem:[#allocation2 + $0x8] sm:$0xff] %vm309_vm1, %v1016_v1  ;;  %v320_v7 = vmul.bf16 1043676725, %v318_v4  ;;  %724 = vmatpush3.bf16.xpose.msra.mxu0 %v345_v5  ;;  %v326_v10 = vand.u32 127, %v325_v9  ;;  %vm390_vm4 = vcmask 130048  }
  0x7c   : > { %v1017_v20 = vmov 0   ;;  %s266_s18 = scalar_lea.vmem [#allocation10], %s1254_s10  ;;  %s704_s24 = sshll.u32 %s1251_s21, 4 }
  0x7d   : > { %v705_v8 = vcombine.low %v319_v6, %v320_v7  ;;  %vm328_vm3 = vcmp.lt.s32.totalorder %v326_v10, 8  ;;  %815 = vset.pattern.permute.xlu1 %v1017_v20  ;;  %816 = vset.pattern.permute.xlu0 %v1017_v20  ;;  %v818_v29 = vld [vmem:[%s266_s18] sm:$0xff]   ;;  %s298_s16 = scalar_lea.vmem [#allocation11], %s704_s24  ;;  %s718_s5 = sshll.u32 %s999_s15, 8 }
  0x7e   : > { %v329_v11 = vsel %vm328_vm3, 0.0, %v1016_v1  ;;  %730 = vmatpush3.bf16.msra.mxu1 %v818_v29  ;;  %s548_s20 = sshll.u32 %s298_s16, 4  ;;  %s1296_s6 = scalar_lea.hbm %s1349_s3, %s718_s5  ;;  %s1290_s20 = int_to_ptr.vmem [resolvable:$true] %s548_s20 }
  0x7f   : > { %s533_s8 = scalar_lea.sflag [#allocation7], %s1251_s21  ;;  %s921_s26 = scalar_lea.vmem %s1290_s20, 256 }
  0x80   : > { %v436_v57 = vld [vmem:[#allocation4] sm:$0xff]  ;;  %v437_v59 = vld [vmem:[#allocation4 + $0x8] sm:$0xff]  ;;  %p922_p0 = scmp.ne.s32.totalorder %s1290_s20, %s921_s26  ;;  %p1378_p10 = scmp.ne.s32.totalorder %s1364_s25, 0 }
  0x81   : > { %v421_v45 = vld [vmem:[#allocation3] sm:$0xff]  ;;  %v422_v48 = vld [vmem:[#allocation3 + $0x8] sm:$0xff]  ;;  %s1018_s15 = smov [#allocation11]  }
  0x82   : > { %726 = vmatmul.mubr.msk.bf16.vlgmr.msra.gmra.mrb[0].mxu0 %vm314_vm0, %v705_v8  ;;  %v388_v21 = vld [vmem:[#allocation2] sm:$0xff]  ;;  %v389_v24 = vld [vmem:[#allocation2 + $0x8] sm:$0xff]  ;;  %p923_p8 = pnand %p922_p0, %p1378_p10  ;;  %s925_s1 = sshll.u32 %s1018_s15, 4  ;;  %s926_s1 = int_to_ptr.vmem [resolvable:$false] %s925_s1 }
  0x83   : > { %s927_s28 = scalar_lea.vmem %s926_s1, 512  ;;  %p928_p12 = scmp.lt.s32.totalorder %s1290_s20, %s926_s1 }
  0x84   : > { %p924_p9 = pneg %p923_p8  ;;  %p929_p1 = scmp.lt.s32.totalorder %s927_s28, %s921_s26 }
  0x86   : > { %p930_p6 = por %p929_p1, %p928_p12 }
  0x88   : > { %p931_p13 = pnand %p930_p6, %p924_p9 }
 0x155   : > { %v381_v12 = vpop.f32.mrb[0].mxu0 }
 0x156   : > { %v382_v13 = vadd.f32 %v381_v12, %v329_v11  ;;  %v727_v14 = vpop.f32.mrb[1].mxu0 }
 0x157   : > { %v384_v15 = vpop.f32.mrb[2].mxu0 }
 0x158   : > { %v385_v16 = vadd.f32 %v384_v15, %v329_v11  ;;  %v728_v17 = vpop.f32.mrb[3].mxu0  ;;  %v391_v18 = vsel %vm390_vm4, %v382_v13, -inf }
 0x159   : > { %392 = vmax.xlane.f32.xlu0 %v391_v18 }
 0x15a   : > { %v394_v19 = vsel %vm390_vm4, %v385_v16, -inf }
 0x15d   : > { %395 = vmax.xlane.f32.xlu0 %v394_v19 }
 0x1e6   : > { %v393_v22 = vpop.xlane.xlu0 %392 }
 0x1e7   : > { %v397_v23 = vmax.f32 %v388_v21, %v393_v22 }
 0x1e9   : > { %v399_v25 = vsub.f32 %v388_v21, %v397_v23  ;;  %507 = vst.msk [vmem:[#allocation2] sm:$0xff] %vm309_vm1, %v397_v23  ;;  %407 = vperm.xlu1 %815, %v397_v23  }
 0x1ea   : > { %v396_v26 = vpop.xlane.xlu0 %395 }
 0x1eb   : > { %v398_v27 = vmax.f32 %v389_v24, %v396_v26  ;;  %v401_v42 = vmul.f32 1.442695, %v399_v25 }
 0x1ed   : > { %v400_v28 = vsub.f32 %v389_v24, %v398_v27  ;;  %508 = vst.msk [vmem:[#allocation2 + $0x8] sm:$0xff] %vm309_vm1, %v398_v27  ;;  %412 = vperm.xlu1 %815, %v398_v27  }
 0x1ef   : > { %v403_v41 = vmul.f32 1.442695, %v400_v28 }
 0x268   : > { %v408_v30 = vpop.permute.xlu1 %407 }
 0x269   : > { %v415_v31 = vsub.f32 %v382_v13, %v408_v30 }
 0x26b   : > { %v417_v32 = vmul.f32 1.442695, %v415_v31 }
 0x26c   : > { %v413_v33 = vpop.permute.xlu1 %412 }
 0x26d   : > { %819 = vpow2.f32 %v417_v32  ;;  %v416_v34 = vsub.f32 %v385_v16, %v413_v33 }
 0x26f   : > { %v419_v35 = vmul.f32 1.442695, %v416_v34 }
 0x271   : > { %821 = vpow2.f32 %v419_v35 }
 0x272   : > { %823 = vpow2.f32 %v403_v41 }
 0x273   : > { %825 = vpow2.f32 %v401_v42 }
 0x277   : > { %v820_v36 = vpop.eup %819 }
 0x278   : > { %v425_v37 = vsel %vm390_vm4, %v820_v36, 0.0 }
 0x279   : > { %426 = vadd.xlane.f32.xlu0 %v425_v37 }
 0x27b   : > { %v822_v38 = vpop.eup %821 }
 0x27c   : > { %v428_v39 = vsel %vm390_vm4, %v822_v38, 0.0  ;;  %v450_v40 = vpack.c.bf16 %v822_v38, %v820_v36  ;;  %v824_v43 = vpop.eup %823 }
 0x27d   : > { %429 = vadd.xlane.f32.xlu1 %v428_v39  ;;  %v826_v44 = vpop.eup %825  ;;  %v424_v50 = vmul.f32 %v824_v43, %v422_v48 }
 0x27e   : > { %732 = vmatmul.mubr.msk.bf16.vlgmr.msra.gmra.mrb[0].mxu1 %vm390_vm4, %v450_v40  ;;  %v423_v46 = vmul.f32 %v826_v44, %v421_v45 }
 0x28e   : > { %445 = vperm.xlu1 %815, %v824_v43  }
 0x28f   : > { %440 = vperm.xlu0 %816, %v826_v44  }
 0x306   : > { %v427_v47 = vpop.xlane.xlu0 %426 }
 0x307   : > { %v431_v49 = vadd.f32 %v427_v47, %v423_v46 }
 0x309   : > { %434 = vst.msk [vmem:[#allocation3] sm:$0xff] %vm309_vm1, %v431_v49 }
 0x30a   : > { %v430_v51 = vpop.xlane.xlu1 %429 }
 0x30b   : > { %v432_v52 = vadd.f32 %v430_v51, %v424_v50 }
 0x30d   : > { %435 = vst.msk [vmem:[#allocation3 + $0x8] sm:$0xff] %vm309_vm1, %v432_v52 }
 0x30e   : > { %v441_v58 = vpop.permute.xlu0 %440  ;;  %v446_v60 = vpop.permute.xlu1 %445 }
 0x30f   : > { %v448_v61 = vmul.f32 %v441_v58, %v436_v57  ;;  %v449_v63 = vmul.f32 %v446_v60, %v437_v59 }
 0x310   : > { %v512_v53 = vld [vmem:[#allocation3] sm:$0xff] }
 0x311   : > { %827 = vrcp.f32 %v512_v53 }
 0x314   : > { %v513_v54 = vld [vmem:[#allocation3 + $0x8] sm:$0xff] }
 0x315   : > { %829 = vrcp.f32 %v513_v54 }
 0x31b   : > { %v828_v55 = vpop.eup %827 }
 0x31c   : > { %520 = vperm.xlu0 %816, %v828_v55  }
 0x31f   : > { %v830_v56 = vpop.eup %829 }
 0x320   : > { %525 = vperm.xlu0 %816, %v830_v56  }
 0x351   : > { %v496_v62 = vpop.f32.mrb[0].mxu1 }
 0x352   : > { %v503_v0 = vadd.f32 %v496_v62, %v448_v61  ;;  %v733_v1 = vpop.f32.mrb[1].mxu1 }
 0x353   : > { %v499_v2 = vpop.f32.mrb[2].mxu1 }
 0x354   : > { %505 = vst.msk [vmem:[#allocation4] sm:$0xff] %vm314_vm0, %v503_v0  ;;  %v504_v3 = vadd.f32 %v499_v2, %v449_v63  ;;  %v734_v4 = vpop.f32.mrb[3].mxu1 }
 0x356   : > { %506 = vst.msk [vmem:[#allocation4 + $0x8] sm:$0xff] %vm314_vm0, %v504_v3 }
 0x35b   : > { %v516_v5 = vld [vmem:[#allocation4] sm:$0xff] }
 0x35d   : > { %v517_v8 = vld [vmem:[#allocation4 + $0x8] sm:$0xff] }
 0x39b   : > { %v521_v6 = vpop.permute.xlu0 %520 }
 0x39c   : > { %v528_v7 = vmul.f32 %v521_v6, %v516_v5 }
 0x39e   : > { %530 = vst.msk [vmem:[%s298_s16] sm:$0xff] %vm314_vm0, %v528_v7 }
 0x39f   : > { %v526_v9 = vpop.permute.xlu0 %525 }
 0x3a0   : > { %v529_v10 = vmul.f32 %v526_v9, %v517_v8 }
 0x3a2   : > { %531 = vst.msk [vmem:[%s298_s16 + $0x8] sm:$0xff] %vm314_vm0, %v529_v10 }
 0x3a3   : > { %934 = shalt.err (!%p931_p13)
}
 0x3a4   : > { %s935_s29 = scalar_lea.hbm %s1296_s6, 256  ;;  %s939_s4 = scalar_lea.hbm %s1349_s3, 512 }
 0x3a5   : > { %p936_p11 = scmp.ne.s32.totalorder %s1296_s6, %s935_s29  ;;  %p940_p7 = scmp.lt.u32.totalorder %s1296_s6, %s1349_s3 }
 0x3a6   : > { %p941_p4 = scmp.lt.u32.totalorder %s939_s4, %s935_s29  ;;  %p943_p0 = scmp.lt.u32.totalorder %s935_s29, %s1296_s6 }
 0x3a7   : > { %p937_p2 = pnand %p936_p11, %p1378_p10 }
 0x3a8   : > { %p942_p3 = por %p941_p4, %p940_p7 }
 0x3a9   : > { %p938_p5 = pneg %p937_p2 }
 0x3aa   : > { %p944_p8 = por %p943_p0, %p942_p3 }
 0x3ac   : > { %p945_p9 = pnand %p944_p8, %p938_p5 }
 0x3ae   : > { %948 = shalt.err (!%p945_p9)
}
 0x3af   : > { %s1019_s19 = smov 128   ;;  %s1020_s9 = smov 8  }
 0x3b0   : > { %741 = dma.vmem_to_hbm [thread:$0]  (%p1378_p10), %s1290_s20, 256, %s1296_s6, %s533_s8, %s1019_s19, %s1019_s19, %s1020_s9  }
 0x3b1 PF: > { %s563_s18 = sand.u32 1, %s987_s12   ;;  %p1379_p12 = scmp.ne.s32.totalorder %s1366_s27, 0 }
 0x3b2   : > { %p1380_p1 = scmp.ge.s32.totalorder %s1007_s17, 2  ;;  %s564_s24 = scalar_lea.sflag [#allocation7], %s563_s18 }
 0x3b4   : > { %p754_p6 = pnand %p1380_p1, %p1379_p12 }
 0x3b6   : > { %982 = dma.done.wait (!%p754_p6), %s564_s24, 256  }
 0x3b7   : > { %984 = vsyncadd (!%p754_p6), %s564_s24, 4294967040  ;;  %s22_s17 = sadd.s32 1, %s1007_s17   ;;  %s1381_s16 = sld [smem:[#allocation17_spill]] }
 0x3b8   : > { %p19_p13 = scmp.ge.s32.totalorder %s22_s17, 4   ;;  %s1382_s15 = sld [smem:[#allocation15_spill]] }
 0x3b9   : > { %s1383_s25 = sld [smem:[#allocation16_spill]]  ;;  %s1384_s12 = smov %s991_s13 }
 0x3ba   : > { %s1385_s13 = smov %s995_s14  ;;  %21 = sbr.rel (!%p19_p13) target bundleno = 10 (0xa), region = 109 }
 0x3bd   : > { %s1386_s14 = smov %s1381_s16 }
 0x3bf   : > { %s1387_s16 = smov %s1383_s25 }
 0x3c1   :  { %569 = vsyncpa [#allocation6], 1 }
 0x3c2   :  { %571 = vsyncpa [#allocation6 + $0x1], 1 }
 0x3c3   :  { %572 = vsyncpa [#allocation9], 1 }
 0x3c4   :  { %574 = vsyncpa [#allocation9 + $0x1], 1 }
 0x3c5   :  { %575 = vsyncpa [#allocation7], 1 }
 0x3c6   :  { %577 = vsyncpa [#allocation7 + $0x1], 1 }

</bundles_post_ra>
